<compile_context>
chip_gen: v7x
topology: tpu7x:2x2x1
jax: 0.10.0
libtpu: 0.0.40
codegen_flags: <defaults>
</compile_context>

<pallas_src>
import functools

import jax
import jax.numpy as jnp
from jax.experimental import pallas as pl
from jax.experimental.pallas import tpu as pltpu


def _attflow_kernel(ctx_ref, qry_ref, w_ref, g_ref, *, approx_recip, split_out):
    # Block shapes: ctx (Bb,T,E), qry (Bb,J,E), w (3,E),
    # out (Bb,T,4E) when E%128==0 else (Bb,T,4,E).
    c = ctx_ref[...].astype(jnp.float32)          # (Bb, T, E)
    q = qry_ref[...].astype(jnp.float32)          # (Bb, J, E)
    w_c = w_ref[0:1, :].astype(jnp.float32)       # (1, E)
    w_q = w_ref[1:2, :].astype(jnp.float32)       # (1, E)
    w_m = w_ref[2:3, :].astype(jnp.float32)       # (1, E)

    # Similarity matrix stored transposed as (Bb, J, T): the long context axis
    # T sits on the 128-lane axis, so both softmaxes over T are lane reduces.
    # w_m is applied on the small query side (no (Bb,T,E) temp).
    qm = q * w_m                                                     # (Bb, J, E)
    S = jnp.einsum("bje,bte->bjt", qm, c,
                   preferred_element_type=jnp.float32)               # (Bb, J, T)
    s_c = jnp.sum(c * w_c, axis=2)                                   # (Bb, T)
    s_q = jnp.sum(q * w_q, axis=2)                                   # (Bb, J)
    S = S + s_c[:, None, :] + s_q[:, :, None]                        # (Bb, J, T)

    # F.softmax(S, dim=1) in the original (B,T,J) layout == softmax over the
    # context axis T, which is the last (lane) axis here.
    S_shift = S - jnp.max(S, axis=2, keepdims=True)
    expS = jnp.exp(S_shift)
    S_soft = expS * pl.reciprocal(jnp.sum(expS, axis=2, keepdims=True),
                                  approx=approx_recip)               # (Bb, J, T)

    # b_t: max over the query axis J, then softmax over T (lane reduce).
    m = jnp.max(S, axis=1)                                           # (Bb, T)
    m = m - jnp.max(m, axis=1, keepdims=True)
    em = jnp.exp(m)
    b_t = em * pl.reciprocal(jnp.sum(em, axis=1, keepdims=True),
                             approx=approx_recip)                    # (Bb, T)

    # U_attd[b,t,e] = sum_j S_soft[b,j,t] * q[b,j,e]   (contract J on the MXU)
    U = jnp.einsum("bjt,bje->bte", S_soft, q,
                   preferred_element_type=jnp.float32)               # (Bb, T, E)

    # h[b,e] = sum_t b_t[b,t] * c[b,t,e] — MXU contraction over T (no Bb*T*E
    # temp, no sublane-axis reduce); kept as a rank-3 bmm like the reference.
    h = jnp.einsum("bxt,bte->bxe", b_t[:, None, :], c,
                   preferred_element_type=jnp.float32)               # (Bb, 1, E)

    od = g_ref.dtype
    E = c.shape[2]
    if split_out:
        # (Bb, T, 4, E) output: four full-tile stores, no lane-axis concat.
        # The wrapper reshape to (B, T, 4E) is contiguous and free.
        g_ref[:, :, 0, :] = c.astype(od)
        g_ref[:, :, 1, :] = U.astype(od)
        g_ref[:, :, 2, :] = (c * U).astype(od)
        g_ref[:, :, 3, :] = (c * h).astype(od)
    else:
        # E % 128 == 0: 128-aligned lane-dense segment stores into (Bb,T,4E).
        g_ref[:, :, 0:E] = c.astype(od)
        g_ref[:, :, E:2 * E] = U.astype(od)
        g_ref[:, :, 2 * E:3 * E] = (c * U).astype(od)
        g_ref[:, :, 3 * E:4 * E] = (c * h).astype(od)


def _vmem_capacity_bytes():
    """Per-TensorCore VMEM capacity (generation-aware), with a safe fallback."""
    try:
        info = pltpu.get_tpu_info()
        cap = getattr(info, "vmem_capacity_bytes", None)
        if cap:
            return int(cap)
    except Exception:
        pass
    return 64 * 1024 * 1024  # conservative: v7x per-TC VMEM


def _num_tensorcores():
    """Heuristic TensorCore count per chip (megacore / dual-TC detection)."""
    try:
        kind = jax.devices()[0].device_kind.lower()
    except Exception:
        return 1
    return 2 if any(tag in kind for tag in ("v4", "v5p", "v7", "7x")) else 1


def _pick_block_batch(B, T, J, E, in_itemsize, out_itemsize, vmem_cap, num_cores):
    """Largest divisor Bb of B whose blocks + f32 intermediates fit the VMEM
    budget; on dual-TC chips prefer a grid length divisible by the core count
    so the 'parallel' batch axis splits evenly across TensorCores."""
    # Double-buffered pipeline blocks (inputs + 4E-wide output).
    io_bytes = 2 * ((T * E + J * E) * in_itemsize + 4 * T * E * out_itemsize)
    # In-kernel f32 intermediates: c, U, c*U, c*h (~4*T*E), S/expS (~2*J*T),
    # q/qm (~2*J*E).
    tmp_bytes = (4 * T * E + 2 * J * T + 2 * J * E) * 4
    per_batch = io_bytes + tmp_bytes
    budget = vmem_cap // 2  # headroom for compiler scratch / spills

    fits = [bb for bb in range(1, B + 1) if B % bb == 0 and bb * per_batch <= budget]
    if not fits:
        # TODO(synk): add a T-tiled grid axis with a two-pass (stats-then-
        # normalize) softmax over T so very large T*E fits v7x's 64 MiB VMEM;
        # until then fall back to the smallest block and let Mosaic decide.
        return 1
    if num_cores > 1:
        even = [bb for bb in fits if (B // bb) % num_cores == 0]
        if even:
            fits = even
    return max(fits)


def att_flow_layer(context, query, alpha_weight, *, out_dtype=None,
                   approx_reciprocal=True):
    """context: (B, T, E); query: (B, J, E); alpha_weight: (1, 3E).

    Returns G: (B, T, 4E).

    The kernel is HBM-bound at realistic BiDAF shapes and the (B,T,4E) output
    dominates traffic: for production pass bf16 context/query and
    out_dtype=jnp.bfloat16 (halves the dominant write).  approx_reciprocal
    routes the softmax denominators to the EUP (free slot); set False if you
    need bit-tight fp32 softmax normalization.
    """
    B, T, E = context.shape
    Bq, J, Eq = query.shape
    assert B == Bq and E == Eq
    assert alpha_weight.shape == (1, 3 * E)
    out_dtype = jnp.dtype(out_dtype) if out_dtype is not None else jnp.dtype(context.dtype)

    # Split the (1, 3E) Linear weight into three (E,) chunks, stacked as (3, E).
    w = alpha_weight.reshape(3, E).astype(jnp.float32)

    vmem_cap = _vmem_capacity_bytes()
    num_cores = _num_tensorcores()
    in_item = jnp.dtype(context.dtype).itemsize
    out_item = out_dtype.itemsize
    Bb = _pick_block_batch(B, T, J, E, in_item, out_item, vmem_cap, num_cores)
    grid = (B // Bb,)

    split_out = (E % 128) != 0
    kernel = functools.partial(_attflow_kernel, approx_recip=approx_reciprocal,
                               split_out=split_out)

    if split_out:
        out_shape = jax.ShapeDtypeStruct((B, T, 4, E), out_dtype)
        out_spec = pl.BlockSpec((Bb, T, 4, E), lambda b: (b, 0, 0, 0))
    else:
        out_shape = jax.ShapeDtypeStruct((B, T, 4 * E), out_dtype)
        out_spec = pl.BlockSpec((Bb, T, 4 * E), lambda b: (b, 0, 0))

    vmem_limit = max(32 * 1024 * 1024, int(vmem_cap * 0.75))

    g = pl.pallas_call(
        kernel,
        out_shape=out_shape,
        grid_spec=pltpu.PrefetchScalarGridSpec(
            num_scalar_prefetch=0,
            grid=grid,
            in_specs=[
                pl.BlockSpec((Bb, T, E), lambda b: (b, 0, 0)),
                pl.BlockSpec((Bb, J, E), lambda b: (b, 0, 0)),
                pl.BlockSpec((3, E), lambda b: (0, 0)),
            ],
            out_specs=out_spec,
        ),
        compiler_params=pltpu.CompilerParams(
            dimension_semantics=("parallel",),
            vmem_limit_bytes=vmem_limit,
        ),
    )(context, query, w)

    if split_out:
        g = g.reshape(B, T, 4 * E)  # contiguous reshape: free
    return g


def att_flow_reference(context, query, alpha_weight):
    """Pure-JAX reference mirroring the PyTorch forward exactly."""
    B, T, E = context.shape
    J = query.shape[1]
    c_ext = jnp.broadcast_to(context[:, :, None, :], (B, T, J, E))
    q_ext = jnp.broadcast_to(query[:, None, :, :], (B, T, J, E))
    cated = jnp.concatenate([c_ext, q_ext, c_ext * q_ext], axis=3)   # (B,T,J,3E)
    S = jnp.einsum("btjk,k->btj", cated, alpha_weight[0])            # (B,T,J)
    S_softmax_row = jax.nn.softmax(S, axis=1)
    S_max_col = jnp.max(S, axis=2)                                   # (B,T)
    b_t = jax.nn.softmax(S_max_col, axis=1)[:, None, :]              # (B,1,T)
    U_attd = jnp.einsum("btj,bje->bte", S_softmax_row, query)        # (B,T,E)
    h = jnp.einsum("bxt,bte->be", b_t, context)                      # (B,E)
    H_attd = jnp.broadcast_to(h[:, None, :], (B, T, E))
    G = jnp.concatenate(
        [context, U_attd, context * U_attd, context * H_attd], axis=2)
    return G


if __name__ == "__main__":
    key = jax.random.PRNGKey(0)

    # --- 1) E % 128 != 0 (split (B,T,4,E) output) path, strict fp32 check ---
    B, T, J, E = 2, 16, 8, 32  # batch, context len, query len, embed_length
    kc, kq, kw, kc2, kq2, kw2 = jax.random.split(key, 6)
    context = jax.random.normal(kc, (B, T, E), dtype=jnp.float32)
    query = jax.random.normal(kq, (B, J, E), dtype=jnp.float32)
    # Deterministic init of alpha: nn.Linear(3E, 1, bias=False) weight -> (1, 3E)
    alpha_weight = (jax.random.uniform(kw, (1, 3 * E), dtype=jnp.float32) - 0.5) * 0.2

    g = jax.block_until_ready(
        att_flow_layer(context, query, alpha_weight, approx_reciprocal=False))
    g_ref = att_flow_reference(context, query, alpha_weight)
    assert g.shape == (B, T, 4 * E)
    assert jnp.allclose(g, g_ref, atol=1e-4, rtol=1e-4), "mismatch (E=32 path)"

    # --- 2) E % 128 == 0 (lane-dense segment-store) path, strict fp32 check ---
    B2, T2, J2, E2 = 2, 16, 8, 128
    context2 = jax.random.normal(kc2, (B2, T2, E2), dtype=jnp.float32)
    query2 = jax.random.normal(kq2, (B2, J2, E2), dtype=jnp.float32)
    alpha_weight2 = (jax.random.uniform(kw2, (1, 3 * E2), dtype=jnp.float32) - 0.5) * 0.1

    g2 = jax.block_until_ready(
        att_flow_layer(context2, query2, alpha_weight2, approx_reciprocal=False))
    g2_ref = att_flow_reference(context2, query2, alpha_weight2)
    assert g2.shape == (B2, T2, 4 * E2)
    assert jnp.allclose(g2, g2_ref, atol=1e-4, rtol=1e-4), "mismatch (E=128 path)"

    # --- 3) Recommended production config: bf16 in / bf16 out / approx recip ---
    ctx_bf = context2.astype(jnp.bfloat16)
    qry_bf = query2.astype(jnp.bfloat16)
    g3 = jax.block_until_ready(
        att_flow_layer(ctx_bf, qry_bf, alpha_weight2, out_dtype=jnp.bfloat16))
    g3_ref = att_flow_reference(ctx_bf.astype(jnp.float32),
                                qry_bf.astype(jnp.float32), alpha_weight2)
    assert g3.dtype == jnp.bfloat16
    assert jnp.allclose(g3.astype(jnp.float32), g3_ref, atol=5e-2, rtol=5e-2), \
        "mismatch (bf16 path)"

    print("KERNEL_OK")
</pallas_src>

<mosaic_0001>
module attributes {stable_mosaic.version = 11 : i64} {
  func.func @_attflow_kernel(%arg0: i32, %arg1: memref<2x16x32xf32, #tpu.memory_space<vmem>>, %arg2: memref<2x8x32xf32, #tpu.memory_space<vmem>>, %arg3: memref<3x32xf32, #tpu.memory_space<vmem>>, %arg4: memref<2x16x4x32xf32, #tpu.memory_space<vmem>>) attributes {dimension_semantics = [#tpu.dimension_semantics<parallel>], iteration_bounds = array<i64: 1>, scalar_prefetch = 0 : i64, scratch_operands = 0 : i64, tpu.core_type = #tpu.core_type<tc>, window_params = [{transform_indices = @transform_0, window_bounds = array<i64: 2, 16, 32>}, {transform_indices = @transform_1, window_bounds = array<i64: 2, 8, 32>}, {pipeline_mode = #tpu.pipeline_mode<synchronous>, transform_indices = @transform_2, window_bounds = array<i64: 3, 32>}, {transform_indices = @transform_3, window_bounds = array<i64: 2, 16, 4, 32>}]} {
    %c0 = arith.constant 0 : index
    %c0_0 = arith.constant 0 : index
    %c0_1 = arith.constant 0 : index
    %0 = vector.load %arg1[%c0, %c0_0, %c0_1] : memref<2x16x32xf32, #tpu.memory_space<vmem>>, vector<2x16x32xf32>
    %c0_2 = arith.constant 0 : index
    %c0_3 = arith.constant 0 : index
    %c0_4 = arith.constant 0 : index
    %1 = vector.load %arg2[%c0_2, %c0_3, %c0_4] : memref<2x8x32xf32, #tpu.memory_space<vmem>>, vector<2x8x32xf32>
    %c0_5 = arith.constant 0 : index
    %c0_6 = arith.constant 0 : index
    %2 = vector.load %arg3[%c0_5, %c0_6] : memref<3x32xf32, #tpu.memory_space<vmem>>, vector<1x32xf32>
    %c1 = arith.constant 1 : index
    %c0_7 = arith.constant 0 : index
    %3 = vector.load %arg3[%c1, %c0_7] : memref<3x32xf32, #tpu.memory_space<vmem>>, vector<1x32xf32>
    %c2 = arith.constant 2 : index
    %c0_8 = arith.constant 0 : index
    %4 = vector.load %arg3[%c2, %c0_8] : memref<3x32xf32, #tpu.memory_space<vmem>>, vector<1x32xf32>
    %5 = vector.shape_cast %4 : vector<1x32xf32> to vector<1x1x32xf32>
    %6 = vector.broadcast %5 : vector<1x1x32xf32> to vector<2x8x32xf32>
    %7 = arith.mulf %1, %6 : vector<2x8x32xf32>
    "tpu.trace_start"() <{level = 10 : i32, message = "bje,bte->bjt"}> : () -> ()
    %cst = arith.constant dense<0.000000e+00> : vector<2x8x16xf32>
    %8 = tpu.matmul %7, %0, %cst {dimension_numbers = #tpu.dot_dimension_numbers<[2], [2], [1], [1], [0, 0, 0, 1, 1, 1], [0], [0]>} : vector<2x8x32xf32>, vector<2x16x32xf32>, vector<2x8x16xf32> -> vector<2x8x16xf32>
    "tpu.trace_stop"() : () -> ()
    %9 = vector.shape_cast %2 : vector<1x32xf32> to vector<1x1x32xf32>
    %10 = vector.broadcast %9 : vector<1x1x32xf32> to vector<2x16x32xf32>
    %11 = arith.mulf %0, %10 : vector<2x16x32xf32>
    %cst_9 = arith.constant dense<0.000000e+00> : vector<2x16xf32>
    %12 = vector.multi_reduction <add>, %11, %cst_9 [2] : vector<2x16x32xf32> to vector<2x16xf32>
    %13 = vector.shape_cast %3 : vector<1x32xf32> to vector<1x1x32xf32>
    %14 = vector.broadcast %13 : vector<1x1x32xf32> to vector<2x8x32xf32>
    %15 = arith.mulf %1, %14 : vector<2x8x32xf32>
    %cst_10 = arith.constant dense<0.000000e+00> : vector<2x8xf32>
    %16 = vector.multi_reduction <add>, %15, %cst_10 [2] : vector<2x8x32xf32> to vector<2x8xf32>
    %17 = vector.shape_cast %12 : vector<2x16xf32> to vector<2x1x16xf32>
    %18 = vector.broadcast %17 : vector<2x1x16xf32> to vector<2x8x16xf32>
    %19 = arith.addf %8, %18 : vector<2x8x16xf32>
    %20 = vector.shape_cast %16 : vector<2x8xf32> to vector<2x8x1xf32>
    %21 = vector.broadcast %20 : vector<2x8x1xf32> to vector<2x8x16xf32>
    %22 = arith.addf %19, %21 : vector<2x8x16xf32>
    %cst_11 = arith.constant dense<0xFF800000> : vector<2x8xf32>
    %23 = vector.multi_reduction <maximumf>, %22, %cst_11 [2] : vector<2x8x16xf32> to vector<2x8xf32>
    %24 = vector.shape_cast %23 : vector<2x8xf32> to vector<2x8x1xf32>
    %25 = vector.broadcast %24 : vector<2x8x1xf32> to vector<2x8x16xf32>
    %26 = arith.subf %22, %25 : vector<2x8x16xf32>
    %27 = math.exp %26 : vector<2x8x16xf32>
    %cst_12 = arith.constant dense<0.000000e+00> : vector<2x8xf32>
    %28 = vector.multi_reduction <add>, %27, %cst_12 [2] : vector<2x8x16xf32> to vector<2x8xf32>
    %29 = vector.shape_cast %28 : vector<2x8xf32> to vector<2x8x1xf32>
    %30 = tpu.reciprocal %29 : vector<2x8x1xf32> -> vector<2x8x1xf32>
    %31 = vector.broadcast %30 : vector<2x8x1xf32> to vector<2x8x16xf32>
    %32 = arith.mulf %27, %31 : vector<2x8x16xf32>
    %cst_13 = arith.constant dense<0xFF800000> : vector<2x16xf32>
    %33 = vector.multi_reduction <maximumf>, %22, %cst_13 [1] : vector<2x8x16xf32> to vector<2x16xf32>
    %cst_14 = arith.constant dense<0xFF800000> : vector<2xf32>
    %34 = vector.multi_reduction <maximumf>, %33, %cst_14 [1] : vector<2x16xf32> to vector<2xf32>
    %35 = vector.shape_cast %34 : vector<2xf32> to vector<2x1xf32>
    %36 = vector.broadcast %35 : vector<2x1xf32> to vector<2x16xf32>
    %37 = arith.subf %33, %36 : vector<2x16xf32>
    %38 = math.exp %37 : vector<2x16xf32>
    %cst_15 = arith.constant dense<0.000000e+00> : vector<2xf32>
    %39 = vector.multi_reduction <add>, %38, %cst_15 [1] : vector<2x16xf32> to vector<2xf32>
    %40 = vector.shape_cast %39 : vector<2xf32> to vector<2x1xf32>
    %41 = tpu.reciprocal %40 : vector<2x1xf32> -> vector<2x1xf32>
    %42 = vector.broadcast %41 : vector<2x1xf32> to vector<2x16xf32>
    %43 = arith.mulf %38, %42 : vector<2x16xf32>
    "tpu.trace_start"() <{level = 10 : i32, message = "bjt,bje->bte"}> : () -> ()
    %cst_16 = arith.constant dense<0.000000e+00> : vector<2x16x32xf32>
    %44 = tpu.matmul %32, %1, %cst_16 {dimension_numbers = #tpu.dot_dimension_numbers<[1], [1], [2], [2], [0, 0, 0, 2, 1, 2], [0], [0]>} : vector<2x8x16xf32>, vector<2x8x32xf32>, vector<2x16x32xf32> -> vector<2x16x32xf32>
    "tpu.trace_stop"() : () -> ()
    %45 = vector.shape_cast %43 : vector<2x16xf32> to vector<2x1x16xf32>
    "tpu.trace_start"() <{level = 10 : i32, message = "bxt,bte->bxe"}> : () -> ()
    %cst_17 = arith.constant dense<0.000000e+00> : vector<2x1x32xf32>
    %46 = tpu.matmul %45, %0, %cst_17 {dimension_numbers = #tpu.dot_dimension_numbers<[2], [1], [1], [2], [0, 0, 0, 1, 1, 2], [0], [0]>} : vector<2x1x16xf32>, vector<2x16x32xf32>, vector<2x1x32xf32> -> vector<2x1x32xf32>
    "tpu.trace_stop"() : () -> ()
    %c0_18 = arith.constant 0 : index
    %c0_19 = arith.constant 0 : index
    %c0_20 = arith.constant 0 : index
    %c0_21 = arith.constant 0 : index
    %47 = vector.load %arg4[%c0_18, %c0_19, %c0_20, %c0_21] : memref<2x16x4x32xf32, #tpu.memory_space<vmem>>, vector<2x16x1x32xf32>
    %48 = vector.shape_cast %47 : vector<2x16x1x32xf32> to vector<2x16x32xf32>
    %49 = vector.shape_cast %0 : vector<2x16x32xf32> to vector<2x16x1x32xf32>
    tpu.vector_store %arg4[%c0_18, %c0_19, %c0_20, %c0_21], %49 {strides = array<i32>} : memref<2x16x4x32xf32, #tpu.memory_space<vmem>>, vector<2x16x1x32xf32>,
    %c0_22 = arith.constant 0 : index
    %c0_23 = arith.constant 0 : index
    %c1_24 = arith.constant 1 : index
    %c0_25 = arith.constant 0 : index
    %50 = vector.load %arg4[%c0_22, %c0_23, %c1_24, %c0_25] : memref<2x16x4x32xf32, #tpu.memory_space<vmem>>, vector<2x16x1x32xf32>
    %51 = vector.shape_cast %50 : vector<2x16x1x32xf32> to vector<2x16x32xf32>
    %52 = vector.shape_cast %44 : vector<2x16x32xf32> to vector<2x16x1x32xf32>
    tpu.vector_store %arg4[%c0_22, %c0_23, %c1_24, %c0_25], %52 {strides = array<i32>} : memref<2x16x4x32xf32, #tpu.memory_space<vmem>>, vector<2x16x1x32xf32>,
    %53 = arith.mulf %0, %44 : vector<2x16x32xf32>
    %c0_26 = arith.constant 0 : index
    %c0_27 = arith.constant 0 : index
    %c2_28 = arith.constant 2 : index
    %c0_29 = arith.constant 0 : index
    %54 = vector.load %arg4[%c0_26, %c0_27, %c2_28, %c0_29] : memref<2x16x4x32xf32, #tpu.memory_space<vmem>>, vector<2x16x1x32xf32>
    %55 = vector.shape_cast %54 : vector<2x16x1x32xf32> to vector<2x16x32xf32>
    %56 = vector.shape_cast %53 : vector<2x16x32xf32> to vector<2x16x1x32xf32>
    tpu.vector_store %arg4[%c0_26, %c0_27, %c2_28, %c0_29], %56 {strides = array<i32>} : memref<2x16x4x32xf32, #tpu.memory_space<vmem>>, vector<2x16x1x32xf32>,
    %57 = vector.broadcast %46 : vector<2x1x32xf32> to vector<2x16x32xf32>
    %58 = arith.mulf %0, %57 : vector<2x16x32xf32>
    %c0_30 = arith.constant 0 : index
    %c0_31 = arith.constant 0 : index
    %c3 = arith.constant 3 : index
    %c0_32 = arith.constant 0 : index
    %59 = vector.load %arg4[%c0_30, %c0_31, %c3, %c0_32] : memref<2x16x4x32xf32, #tpu.memory_space<vmem>>, vector<2x16x1x32xf32>
    %60 = vector.shape_cast %59 : vector<2x16x1x32xf32> to vector<2x16x32xf32>
    %61 = vector.shape_cast %58 : vector<2x16x32xf32> to vector<2x16x1x32xf32>
    tpu.vector_store %arg4[%c0_30, %c0_31, %c3, %c0_32], %61 {strides = array<i32>} : memref<2x16x4x32xf32, #tpu.memory_space<vmem>>, vector<2x16x1x32xf32>,
    return
  }
  func.func @transform_0(%arg0: i32) -> (i32, i32, i32) {
    %c0_i32 = arith.constant 0 : i32
    %c0_i32_0 = arith.constant 0 : i32
    %c0_i32_1 = arith.constant 0 : i32
    return %arg0, %c0_i32, %c0_i32_0 : i32, i32, i32
  }
  func.func @transform_1(%arg0: i32) -> (i32, i32, i32) {
    %c0_i32 = arith.constant 0 : i32
    %c0_i32_0 = arith.constant 0 : i32
    %c0_i32_1 = arith.constant 0 : i32
    return %arg0, %c0_i32, %c0_i32_0 : i32, i32, i32
  }
  func.func @transform_2(%arg0: i32) -> (i32, i32) {
    %c0_i32 = arith.constant 0 : i32
    %c0_i32_0 = arith.constant 0 : i32
    %c0_i32_1 = arith.constant 0 : i32
    return %c0_i32, %c0_i32_0 : i32, i32
  }
  func.func @transform_3(%arg0: i32) -> (i32, i32, i32, i32) {
    %c0_i32 = arith.constant 0 : i32
    %c0_i32_0 = arith.constant 0 : i32
    %c0_i32_1 = arith.constant 0 : i32
    %c0_i32_2 = arith.constant 0 : i32
    return %arg0, %c0_i32, %c0_i32_0, %c0_i32_1 : i32, i32, i32, i32
  }
}

</mosaic_0001>

<bundles_post_ra>
// kernel: tpu_custom_call.1
= control target key start
LH: loop header
LB: loop body
LE: loop exit
PB: predicated region body
PF: predicated region fallthrough
CT: control target
= control target key end

     0   :  { %8 = vsyncpa [#allocation3], 0  ;;  %s2453_s0 = inlined_call_operand.hbm [shape: f32[2,16,32], index: 0, kind: input, shape index: {}]   ;;  %s2454_s1 = inlined_call_operand.hbm [shape: f32[2,8,32], index: 1, kind: input, shape index: {}]   ;;  %s2455_s2 = inlined_call_operand.vmem [shape: f32[3,32], index: 2, kind: input, shape index: {}]   ;;  %s2456_s3 = inlined_call_operand.hbm [shape: f32[2,16,4,32], index: 3, kind: output, shape index: {}]  }
   0x1   :  { %9 = vsyncpa [#allocation6], 0 }
   0x2   :  { %10 = vsyncpa [#allocation4], 0  ;;  %s2012_s12 = smov [#allocation2]   ;;  %s1940_s16 = scalar_lea.hbm %s2453_s0, 512 }
   0x3   :  { %s16_s13 = sshll.u32 %s2012_s12, 4  ;;  %p1941_p0 = scmp.ne.s32.totalorder %s2453_s0, %s1940_s16  ;;  %s17_s13 = int_to_ptr.vmem [resolvable:$true] %s16_s13 }
   0x4   :  { %p1944_p1 = scmp.lt.u32.totalorder %s1940_s16, %s2453_s0 }
   0x6   :  { %p1946_p2 = pnand %p1944_p1, %p1941_p0 }
   0x8   :  { %1949 = shalt.err (!%p1946_p2)
}
   0x9   :  { %s1950_s21 = scalar_lea.vmem %s17_s13, 512  ;;  %p1955_p4 = scmp.lt.s32.totalorder %s17_s13, %s17_s13 }
   0xa   :  { %p1951_p3 = scmp.ne.s32.totalorder %s17_s13, %s1950_s21  ;;  %p1956_p5 = scmp.lt.s32.totalorder %s1950_s21, %s1950_s21 }
   0xc   :  { %p1957_p6 = por %p1956_p5, %p1955_p4 }
   0xe   :  { %p1958_p7 = pnand %p1957_p6, %p1951_p3 }
  0x10   :  { %1961 = shalt.err (!%p1958_p7)
}
  0x11   :  { %s2013_s22 = smov 128   ;;  %s2014_s23 = smov 8  }
  0x12   :  { %22 = dma.hbm_to_vmem [thread:$0]  %s2453_s0, 512, %s17_s13, [#allocation3], %s2013_s22, %s2013_s22, %s2014_s23  }
  0x13   :  { %s2015_s26 = smov [#allocation5]   ;;  %s1962_s30 = scalar_lea.hbm %s2454_s1, 256 }
  0x14   :  { %s28_s27 = sshll.u32 %s2015_s26, 4  ;;  %p1963_p8 = scmp.ne.s32.totalorder %s2454_s1, %s1962_s30  ;;  %s29_s27 = int_to_ptr.vmem [resolvable:$true] %s28_s27 }
  0x15   :  { %p1966_p9 = scmp.lt.u32.totalorder %s1962_s30, %s2454_s1 }
  0x17   :  { %p1968_p10 = pnand %p1966_p9, %p1963_p8 }
  0x19   :  { %1971 = shalt.err (!%p1968_p10)
}
  0x1a   :  { %s1972_s8 = scalar_lea.vmem %s29_s27, 256  ;;  %p1977_p12 = scmp.lt.s32.totalorder %s29_s27, %s29_s27 }
  0x1b   :  { %p1973_p11 = scmp.ne.s32.totalorder %s29_s27, %s1972_s8  ;;  %p1978_p13 = scmp.lt.s32.totalorder %s1972_s8, %s1972_s8 }
  0x1d   :  { %p1979_p0 = por %p1978_p13, %p1977_p12 }
  0x1f   :  { %p1980_p1 = pnand %p1979_p0, %p1973_p11 }
  0x21   :  { %1983 = shalt.err (!%p1980_p1)
}
  0x22   :  { %34 = dma.hbm_to_vmem [thread:$0]  %s2454_s1, 256, %s29_s27, [#allocation6], %s2013_s22, %s2013_s22, %s2014_s23  }
  0x23   :  { %2006 = dma.done.wait [#allocation3], 512  }
  0x24   :  { %2007 = vsyncadd [#allocation3], 4294966784 }
  0x25   :  { %2008 = dma.done.wait [#allocation6], 256  }
  0x26   :  { %2009 = vsyncadd [#allocation6], 4294967040  ;;  %v2016_v0 = vmov 0.0|0.0   ;;  %v2017_v1 = vmov 1966171168   ;;  %v93_v3 = vlaneseq  ;;  %vm2018_vm0 = vmmov 0  }
  0x27   :  { %1897 = vmatprep.subr.bf16.mxu0 %v2016_v0  ;;  %1901 = vmatprep.subr.bf16.mxu1 %v2016_v0  ;;  %v741_v2 = vunpack.c.l.s4 %v2017_v1  ;;  %v2019_v4 = vmov 0.0   ;;  %vm66_vm1 = vcmask 261120   ;;  %v2085_v9 = vld [vmem:[#allocation2] sm:$0xff]  ;;  %v2087_v10 = vld [vmem:[#allocation2 + $0x8] sm:$0xff]  ;;  %vm967_vm3 = vcmask 253952   ;;  %v2089_v11 = vld [vmem:[#allocation2 + $0x10] sm:$0xff] }
  0x28   :  { %1863 = vmatprep.mubr.msk.f32.mxu0 %vm2018_vm0, %v2019_v4  ;;  %1870 = vmatprep.mubr.msk.f32.mxu1 %vm2018_vm0, %v2019_v4  ;;  %v2074_v6 = vshrl.u32 %v93_v3, 7  ;;  %vm2078_vm2 = vmpackc.low %vm66_vm1, %vm66_vm1  ;;  %v2093_v12 = vpack.c.bf16 %v2087_v10, %v2085_v9  ;;  %v739_v13 = vcombine.high %v2085_v9, %v2085_v9  ;;  %v788_v15 = vcombine.high %v2087_v10, %v2087_v10  ;;  %v2101_v16 = vld [vmem:[#allocation2 + $0x18] sm:$0xff]  ;;  %v2124_v29 = vld [vmem:[#allocation5] sm:$0xff] }
  0x29   :  { %v742_v5 = vunpack.c.0.s8 %v741_v2  ;;  %v2107_v18 = vpack.c.bf16 %v2101_v16, %v2089_v11  ;;  %v837_v19 = vcombine.high %v2089_v11, %v2089_v11  ;;  %v2129_v34 = vld [vmem:[#allocation5 + $0x8] sm:$0xff]  ;;  %v1826_v47 = vld [vmem:[%s2455_s2 + $0x2] ss:$0 sm:$0xff]  ;;  %v886_v54 = vcombine.high %v2101_v16, %v2101_v16  ;;  %v1827_v56 = vld [vmem:[%s2455_s2] ss:$0 sm:$0xff] }
  0x2a   :  { %1900 = vmatpush3.bf16.xpose.msk.msra.mxu0 %vm2078_vm2, %v2093_v12  ;;  %v56_v60 = vmul.f32 %v1826_v47, %v2124_v29  ;;  %v57_v1 = vmul.f32 %v1826_v47, %v2129_v34  ;;  %v64_v2 = vmul.f32 %v1827_v56, %v2089_v11  ;;  %v65_v7 = vmul.f32 %v1827_v56, %v2101_v16 }
  0x2b   :  { %v2083_v8 = vsub.s32 %v742_v5, %v2074_v6  ;;  %1904 = vmatpush3.bf16.xpose.msk.msra.mxu1 %vm2078_vm2, %v2107_v18  ;;  %1873 = vmatprep.subr.mxu0 %v2124_v29  ;;  %v62_v5 = vmul.f32 %v1827_v56, %v2085_v9  ;;  %vm104_vm4 = vcmask 130112   ;;  %vm298_vm5 = vcmask 130048  }
  0x2c   :  { %1878 = vmatprep.subr.mxu1 %v2129_v34  ;;  %vm106_vm6 = vcmask 1041409   ;;  %vm337_vm7 = vcmask 123904   ;;  %vm398_vm8 = vcmask 64512  }
  0x2d   :  { %v746_v14 = vrot.slane %v2085_v9, %v2083_v8  ;;  %v795_v17 = vrot.slane %v2087_v10, %v2083_v8  ;;  %v844_v20 = vrot.slane %v2089_v11, %v2083_v8  ;;  %v753_v21 = vrot.slane %v739_v13, %v2083_v8 }
  0x2e   :  { %v802_v24 = vrot.slane %v788_v15, %v2083_v8  ;;  %v851_v27 = vrot.slane %v837_v19, %v2083_v8  ;;  %v893_v55 = vrot.slane %v2101_v16, %v2083_v8  ;;  %v900_v61 = vrot.slane %v886_v54, %v2083_v8 }
  0x2f   :  { %v754_v22 = vcombine.high %v746_v14, %v746_v14  ;;  %v762_v23 = vrot.slane %v746_v14, %v2083_v8  ;;  %v803_v25 = vcombine.high %v795_v17, %v795_v17  ;;  %v811_v26 = vrot.slane %v795_v17, %v2083_v8 }
  0x30   :  { %v852_v28 = vcombine.high %v844_v20, %v844_v20  ;;  %v755_v30 = vcombine.high %v753_v21, %v753_v21  ;;  %v769_v31 = vrot.slane %v753_v21, %v2083_v8  ;;  %v804_v35 = vcombine.high %v802_v24, %v802_v24 }
  0x31   :  { %v776_v32 = vrot.slane %v754_v22, %v2083_v8  ;;  %v784_v33 = vcombine.high %v762_v23, %v762_v23  ;;  %968 = vst.msk [vmem:[#allocation7] sm:$0x1] %vm967_vm3, %v762_v23  ;;  %v818_v36 = vrot.slane %v802_v24, %v2083_v8  ;;  %v825_v37 = vrot.slane %v803_v25, %v2083_v8 }
  0x32   :  { %v833_v38 = vcombine.high %v811_v26, %v811_v26  ;;  %976 = vst.msk [vmem:[#allocation7 + $0x20] sm:$0x1] %vm967_vm3, %v811_v26  ;;  %v783_v39 = vrot.slane %v755_v30, %v2083_v8  ;;  %v785_v40 = vcombine.high %v769_v31, %v769_v31  ;;  %972 = vst.msk [vmem:[#allocation7 + $0x10] sm:$0x1] %vm967_vm3, %v769_v31  ;;  %1864 = vmatmul.mubr.msk.f32.vlgmr.msra.gmra.mrb[0].mxu0 %vm66_vm1, %v56_v60 }
  0x33   :  { %v786_v41 = vcombine.high %v776_v32, %v776_v32  ;;  %969 = vst.msk [vmem:[#allocation7 + $0x4] sm:$0x1] %vm967_vm3, %v776_v32  ;;  %970 = vst.msk [vmem:[#allocation7 + $0x8] sm:$0x1] %vm967_vm3, %v784_v33  ;;  %v853_v42 = vcombine.high %v851_v27, %v851_v27  ;;  %v832_v43 = vrot.slane %v804_v35, %v2083_v8  ;;  %1871 = vmatmul.mubr.msk.f32.vlgmr.msra.gmra.mrb[0].mxu1 %vm66_vm1, %v57_v1 }
  0x34   :  { %v834_v44 = vcombine.high %v818_v36, %v818_v36  ;;  %v835_v45 = vcombine.high %v825_v37, %v825_v37  ;;  %977 = vst.msk [vmem:[#allocation7 + $0x24] sm:$0x1] %vm967_vm3, %v825_v37  ;;  %978 = vst.msk [vmem:[#allocation7 + $0x28] sm:$0x1] %vm967_vm3, %v833_v38  ;;  %v860_v46 = vrot.slane %v844_v20, %v2083_v8  ;;  %v1828_v20 = vld [vmem:[%s2455_s2 + $0x1] ss:$0 sm:$0xff]  ;;  %1874 = vmatpush3.msra.mxu0 %v2124_v29 }
  0x35   :  { %980 = vst.msk [vmem:[#allocation7 + $0x30] sm:$0x1] %vm967_vm3, %v818_v36  ;;  %v787_v48 = vcombine.high %v783_v39, %v783_v39  ;;  %971 = vst.msk [vmem:[#allocation7 + $0xc] sm:$0x1] %vm967_vm3, %v786_v41  ;;  %v867_v49 = vrot.slane %v851_v27, %v2083_v8  ;;  %v874_v50 = vrot.slane %v852_v28, %v2083_v8  ;;  %v73_v21 = vsel %vm66_vm1, %v64_v2, 0.0  ;;  %s2020_s2 = smov [#allocation7]  }
  0x36   :  { %973 = vst.msk [vmem:[#allocation7 + $0x14] sm:$0x1] %vm967_vm3, %v783_v39  ;;  %974 = vst.msk [vmem:[#allocation7 + $0x18] sm:$0x1] %vm967_vm3, %v785_v40  ;;  %v881_v51 = vrot.slane %v853_v42, %v2083_v8  ;;  %v836_v52 = vcombine.high %v832_v43, %v832_v43  ;;  %v882_v53 = vcombine.high %v860_v46, %v860_v46  ;;  %v67_v22 = vsel %vm66_vm1, %v62_v5, 0.0  ;;  %s1813_s15 = sshll.u32 %s2020_s2, 4  ;;  %s1814_s15 = int_to_ptr.vmem [resolvable:$true] %s1813_s15 }
  0x37   :  { %979 = vst.msk [vmem:[#allocation7 + $0x2c] sm:$0x1] %vm967_vm3, %v835_v45  ;;  %981 = vst.msk [vmem:[#allocation7 + $0x34] sm:$0x1] %vm967_vm3, %v832_v43  ;;  %v883_v57 = vcombine.high %v867_v49, %v867_v49  ;;  %v884_v58 = vcombine.high %v874_v50, %v874_v50  ;;  %v901_v62 = vcombine.high %v893_v55, %v893_v55  ;;  %1879 = vmatpush3.msra.mxu1 %v2129_v34  ;;  %s1984_s16 = scalar_lea.vmem %s1814_s15, 2048  ;;  %p1989_p3 = scmp.lt.s32.totalorder %s1814_s15, %s1814_s15 }
  0x38   :  { %982 = vst.msk [vmem:[#allocation7 + $0x38] sm:$0x1] %vm967_vm3, %v834_v44  ;;  %984 = vst.msk [vmem:[#allocation7 + $0x40] sm:$0x1] %vm967_vm3, %v860_v46  ;;  %v885_v59 = vcombine.high %v881_v51, %v881_v51  ;;  %v909_v63 = vrot.slane %v893_v55, %v2083_v8  ;;  %v63_v13 = vmul.f32 %v1827_v56, %v2087_v10  ;;  %74 = vadd.xlane.f32.xlu1 %v73_v21  ;;  %p1985_p2 = scmp.ne.s32.totalorder %s1814_s15, %s1984_s16  ;;  %p1990_p4 = scmp.lt.s32.totalorder %s1984_s16, %s1984_s16 }
  0x39   :  { %975 = vst.msk [vmem:[#allocation7 + $0x1c] sm:$0x1] %vm967_vm3, %v787_v48  ;;  %985 = vst.msk [vmem:[#allocation7 + $0x44] sm:$0x1] %vm967_vm3, %v874_v50  ;;  %v902_v14 = vcombine.high %v900_v61, %v900_v61  ;;  %v916_v15 = vrot.slane %v900_v61, %v2083_v8  ;;  %v923_v17 = vrot.slane %v901_v62, %v2083_v8  ;;  %68 = vadd.xlane.f32.xlu0 %v67_v22 }
  0x3a   :  { %988 = vst.msk [vmem:[#allocation7 + $0x50] sm:$0x1] %vm967_vm3, %v867_v49  ;;  %989 = vst.msk [vmem:[#allocation7 + $0x54] sm:$0x1] %vm967_vm3, %v881_v51  ;;  %v931_v19 = vcombine.high %v909_v63, %v909_v63  ;;  %v76_v26 = vsel %vm66_vm1, %v65_v7, 0.0  ;;  %v70_v27 = vsel %vm66_vm1, %v63_v13, 0.0  ;;  %v84_v28 = vmul.f32 %v1828_v20, %v2129_v34  ;;  %1905 = vmatprep.subr.bf16.mxu0 %v2016_v0  ;;  %p1991_p5 = por %p1990_p4, %p1989_p3 }
  0x3b   :  { %983 = vst.msk [vmem:[#allocation7 + $0x3c] sm:$0x1] %vm967_vm3, %v836_v52  ;;  %986 = vst.msk [vmem:[#allocation7 + $0x48] sm:$0x1] %vm967_vm3, %v882_v53  ;;  %v930_v23 = vrot.slane %v902_v14, %v2083_v8  ;;  %v932_v24 = vcombine.high %v916_v15, %v916_v15  ;;  %v933_v25 = vcombine.high %v923_v17, %v923_v17  ;;  %1908 = vmatprep.subr.bf16.mxu1 %v2016_v0 }
  0x3c   :  { %987 = vst.msk [vmem:[#allocation7 + $0x4c] sm:$0x1] %vm967_vm3, %v884_v58  ;;  %990 = vst.msk [vmem:[#allocation7 + $0x58] sm:$0x1] %vm967_vm3, %v883_v57  ;;  %v83_v30 = vmul.f32 %v1828_v20, %v2124_v29  ;;  %77 = vadd.xlane.f32.xlu1 %v76_v26  ;;  %v88_v32 = vsel %vm66_vm1, %v84_v28, 0.0  ;;  %v94_v29 = vand.u32 127, %v93_v3  ;;  %p1992_p6 = pnand %p1991_p5, %p1985_p2 }
  0x3d   :  { %991 = vst.msk [vmem:[#allocation7 + $0x5c] sm:$0x1] %vm967_vm3, %v885_v59  ;;  %992 = vst.msk [vmem:[#allocation7 + $0x60] sm:$0x1] %vm967_vm3, %v909_v63  ;;  %v934_v31 = vcombine.high %v930_v23, %v930_v23  ;;  %71 = vadd.xlane.f32.xlu0 %v70_v27 }
  0x3e   :  { %993 = vst.msk [vmem:[#allocation7 + $0x64] sm:$0x1] %vm967_vm3, %v923_v17  ;;  %994 = vst.msk [vmem:[#allocation7 + $0x68] sm:$0x1] %vm967_vm3, %v931_v19  ;;  %v85_v33 = vsel %vm66_vm1, %v83_v30, 0.0  ;;  %v99_v35 = vadd.s32 4294967288, %v94_v29  ;;  %v97_v36 = vsub.s32 %v94_v29, %v2074_v6 }
  0x3f   :  { %996 = vst.msk [vmem:[#allocation7 + $0x70] sm:$0x1] %vm967_vm3, %v916_v15  ;;  %995 = vst.msk [vmem:[#allocation7 + $0x6c] sm:$0x1] %vm967_vm3, %v933_v25 }
  0x40   :  { %997 = vst.msk [vmem:[#allocation7 + $0x74] sm:$0x1] %vm967_vm3, %v930_v23  ;;  %998 = vst.msk [vmem:[#allocation7 + $0x78] sm:$0x1] %vm967_vm3, %v932_v24  ;;  %89 = vadd.xlane.f32.xlu1 %v88_v32  ;;  %v102_v37 = vsub.s32 %v99_v35, %v2074_v6 }
  0x41   :  { %999 = vst.msk [vmem:[#allocation7 + $0x7c] sm:$0x1] %vm967_vm3, %v934_v31  ;;  %86 = vadd.xlane.f32.xlu0 %v85_v33 }
  0xc5   :  { %v75_v34 = vpop.xlane.xlu1 %74 }
  0xc6   :  { %v69_v0 = vpop.xlane.xlu0 %68  ;;  %v204_v42 = vrot.slane %v75_v34, %v97_v36 }
  0xc7   :  { %v98_v40 = vrot.slane %v69_v0, %v97_v36 }
  0xc9   :  { %v78_v39 = vpop.xlane.xlu1 %77 }
  0xca   :  { %v72_v38 = vpop.xlane.xlu0 %71  ;;  %v208_v43 = vrot.slane %v78_v39, %v102_v37 }
  0xcb   :  { %v103_v41 = vrot.slane %v72_v38, %v102_v37 }
  0xcc   :  { %v209_v3 = vsel %vm104_vm4, %v208_v43, %v204_v42 }
  0xcd   :  { %v90_v44 = vpop.xlane.xlu1 %89  ;;  %v105_v45 = vsel %vm104_vm4, %v103_v41, %v98_v40 }
  0xce   :  { %v87_v47 = vpop.xlane.xlu0 %86 }
 0x105   :  { %v195_v46 = vpop.f32.mrb[0].mxu0 }
 0x106   :  { %v196_v48 = vadd.f32 %v195_v46, %v105_v45  ;;  %v292_v49 = vpop.f32.mrb[0].mxu1  ;;  %v1865_v50 = vpop.f32.mrb[1].mxu0 }
 0x107   :  { %v293_v51 = vadd.f32 %v292_v49, %v209_v3  ;;  %v1872_v52 = vpop.f32.mrb[1].mxu1 }
 0x108   :  { %v296_v53 = vadd.f32 %v196_v48, %v87_v47 }
 0x109   :  { %v297_v54 = vadd.f32 %v293_v51, %v90_v44 }
 0x10a   :  { %v299_v55 = vsel %vm298_vm5, %v296_v53, -inf }
 0x10b   :  { %v302_v56 = vsel %vm298_vm5, %v297_v54, -inf  ;;  %300 = vmax.xlane.f32.xlu0 %v299_v55  ;;  %v321_v57 = vrot.slane %v299_v55, 4 }
 0x10c   :  { %303 = vmax.xlane.f32.xlu1 %v302_v56  ;;  %v327_v58 = vrot.slane %v302_v56, 4 }
 0x10d   :  { %v322_v59 = vmax.f32 %v299_v55, %v321_v57 }
 0x10e   :  { %v328_v60 = vmax.f32 %v302_v56, %v327_v58 }
 0x10f   :  { %v323_v61 = vrot.slane %v322_v59, 2 }
 0x110   :  { %v329_v62 = vrot.slane %v328_v60, 2 }
 0x111   :  { %v324_v63 = vmax.f32 %v322_v59, %v323_v61 }
 0x112   :  { %v330_v1 = vmax.f32 %v328_v60, %v329_v62 }
 0x113   :  { %v325_v2 = vrot.slane %v324_v63, 1 }
 0x114   :  { %v331_v5 = vrot.slane %v330_v1, 1 }
 0x115   :  { %v326_v7 = vmax.f32 %v324_v63, %v325_v2 }
 0x116   :  { %v332_v13 = vmax.f32 %v330_v1, %v331_v5 }
 0x118   :  { %v335_v14 = vsel %vm106_vm6, %v332_v13, %v326_v7 }
 0x119   :  { %v338_v15 = vsel %vm337_vm7, %v335_v14, -inf }
 0x11a   :  { %339 = vmax.xlane.f32.xlu0 %v338_v15 }
 0x198   :  { %v301_v17 = vpop.xlane.xlu0 %300 }
 0x199   :  { %v304_v19 = vpop.xlane.xlu1 %303  ;;  %v305_v20 = vsub.f32 %v296_v53, %v301_v17 }
 0x19a   :  { %v306_v21 = vsub.f32 %v297_v54, %v304_v19 }
 0x19b   :  { %v307_v22 = vmul.f32 1.442695, %v305_v20 }
 0x19c   :  { %v309_v23 = vmul.f32 1.442695, %v306_v21 }
 0x19d   :  { %1926 = vpow2.f32 %v307_v22 }
 0x19e   :  { %1928 = vpow2.f32 %v309_v23 }
 0x1a7   :  { %v1927_v24 = vpop.eup %1926  ;;  %v340_v25 = vpop.xlane.xlu0 %339 }
 0x1a8   :  { %v1929_v26 = vpop.eup %1928  ;;  %v342_v27 = vrot.slane %v340_v25, 1  ;;  %v345_v28 = vsub.f32 %v326_v7, %v340_v25  ;;  %v311_v30 = vsel %vm298_vm5, %v1927_v24, 0.0 }
 0x1a9   :  { %312 = vadd.xlane.f32.xlu1 %v311_v30  ;;  %v314_v31 = vsel %vm298_vm5, %v1929_v26, 0.0 }
 0x1aa   :  { %v346_v32 = vsub.f32 %v332_v13, %v342_v27  ;;  %315 = vadd.xlane.f32.xlu0 %v314_v31  ;;  %v347_v33 = vmul.f32 1.442695, %v345_v28 }
 0x1ac   :  { %v349_v29 = vmul.f32 1.442695, %v346_v32 }
 0x1ae   :  { %1930 = vpow2.f32 %v349_v29 }
 0x1af   :  { %1932 = vpow2.f32 %v347_v33 }
 0x1b8   :  { %v1931_v0 = vpop.eup %1930 }
 0x1b9   :  { %v353_v34 = vrot.slane %v1931_v0, 7  ;;  %v1933_v35 = vpop.eup %1932 }
 0x1bb   :  { %v354_v36 = vsel %vm106_vm6, %v353_v34, %v1933_v35 }
 0x1bc   :  { %v356_v37 = vsel %vm337_vm7, %v354_v36, 0.0 }
 0x1bd   :  { %357 = vadd.xlane.f32.xlu1 %v356_v37 }
 0x236   :  { %v313_v38 = vpop.xlane.xlu1 %312 }
 0x237   :  { %1934 = vrcp.f32 %v313_v38  ;;  %v316_v39 = vpop.xlane.xlu0 %315 }
 0x238   :  { %1936 = vrcp.f32 %v316_v39 }
 0x241   :  { %v1935_v40 = vpop.eup %1934 }
 0x242   :  { %v1937_v41 = vpop.eup %1936  ;;  %v319_v42 = vmul.f32 %v1935_v40, %v1927_v24 }
 0x243   :  { %v320_v43 = vmul.f32 %v1937_v41, %v1929_v26 }
 0x244   :  { %366 = vxpose.xlu0.b32.start.end [1/1] (short) (narrow) %v319_v42, 16 }
 0x245   :  { %480 = vxpose.xlu1.b32.start.end [1/1] (short) (narrow) %v320_v43, 16 }
 0x24a   :  { %v358_v44 = vpop.xlane.xlu1 %357 }
 0x24b   :  { %1938 = vrcp.f32 %v358_v44 }
 0x255   :  { %v1939_v46 = vpop.eup %1938 }
 0x256   :  { %v361_v48 = vrot.slane %v1939_v46, 1  ;;  %v364_v50 = vmul.f32 %v1939_v46, %v1933_v35 }
 0x258   :  { %v365_v51 = vmul.f32 %v1931_v0, %v361_v48 }
 0x2c4   :  { %v382_v45 = vpop.trf.xlu0 }
 0x2c5   :  { %v496_v47 = vpop.trf.xlu1  ;;  %1875 = vmatprep.mubr.msk.f32.mxu0 %vm398_vm8, %v382_v45 }
 0x2c6   :  { %1880 = vmatprep.mubr.msk.f32.mxu1 %vm398_vm8, %v496_v47 }
 0x2c8   :  { %v383_v3 = vpop.trf.xlu0 }
 0x2c9   :  { %v497_v49 = vpop.trf.xlu1  ;;  %1876 = vmatmul.mubr.msk.f32.vlgmr.msra.gmra.mrb[2].mxu0 %vm398_vm8, %v383_v3 }
 0x2ca   :  { %1881 = vmatmul.mubr.msk.f32.vlgmr.msra.gmra.mrb[2].mxu1 %vm398_vm8, %v497_v49  ;;  %1907 = vmatpush3.bf16.msra.mxu0 %v2093_v12 }
 0x2cb   :  { %1910 = vmatpush3.bf16.msra.mxu1 %v2107_v18  ;;  %1887 = vmatprep.mubr.msk.f32.mxu0 %vm2018_vm0, %v2019_v4  ;;  %v1534_v18 = vsub.s32 0, %v2074_v6 }
 0x2cc   :  { %1894 = vmatprep.mubr.msk.f32.mxu1 %vm2018_vm0, %v2019_v4 }
 0x2cd   :  { %1888 = vmatmul.mubr.msk.f32.vlgmr.msra.gmra.mrb[4].mxu0 %vm298_vm5, %v364_v50 }
 0x2ce   :  { %1895 = vmatmul.mubr.msk.f32.vlgmr.msra.gmra.mrb[4].mxu1 %vm298_vm5, %v365_v51 }
 0x39c   :  { %v1877_v52 = vpop.f32.mrb[2].mxu0 }
 0x39d   :  { %v1053_v53 = vcombine.high %v1877_v52, %v1877_v52  ;;  %v1060_v54 = vrot.slane %v1877_v52, %v2083_v8  ;;  %v1265_v12 = vmul.f32 %v1877_v52, %v2087_v10  ;;  %v1882_v55 = vpop.f32.mrb[2].mxu1  ;;  %v2231_v56 = vpop.f32.mrb[3].mxu0 }
 0x39e   :  { %v1151_v57 = vcombine.high %v1882_v55, %v1882_v55  ;;  %v1158_v58 = vrot.slane %v1882_v55, %v2083_v8  ;;  %v2236_v4 = vmul.f32 %v1882_v55, %v2101_v16  ;;  %v1004_v59 = vcombine.high %v2231_v56, %v2231_v56  ;;  %v2240_v60 = vpop.f32.mrb[3].mxu1 }
 0x39f   :  { %v1067_v61 = vrot.slane %v1053_v53, %v2083_v8  ;;  %v1068_v62 = vcombine.high %v1060_v54, %v1060_v54  ;;  %v1076_v63 = vrot.slane %v1060_v54, %v2083_v8  ;;  %v1321_v1 = vcombine.high %v1265_v12, %v1265_v12 }
 0x3a0   :  { %v1328_v2 = vrot.slane %v1265_v12, %v2083_v8  ;;  %v1165_v5 = vrot.slane %v1151_v57, %v2083_v8  ;;  %v1166_v7 = vcombine.high %v1158_v58, %v1158_v58  ;;  %v1174_v13 = vrot.slane %v1158_v58, %v2083_v8  ;;  %v2247_v14 = vpop.f32.mrb[4].mxu0 }
 0x3a1   :  { %v1069_v15 = vcombine.high %v1067_v61, %v1067_v61  ;;  %v1083_v17 = vrot.slane %v1067_v61, %v2083_v8  ;;  %v1090_v19 = vrot.slane %v1068_v62, %v2083_v8  ;;  %v1098_v20 = vcombine.high %v1076_v63, %v1076_v63  ;;  %1240 = vst.msk [vmem:[#allocation7 + $0x21] sm:$0x1] %vm967_vm3, %v1076_v63  ;;  %v2252_v21 = vpop.f32.mrb[4].mxu1  ;;  %v1889_v22 = vpop.f32.mrb[5].mxu0 }
 0x3a2   :  { %v1335_v23 = vrot.slane %v1321_v1, %v2083_v8  ;;  %v1336_v24 = vcombine.high %v1328_v2, %v1328_v2  ;;  %v1344_v25 = vrot.slane %v1328_v2, %v2083_v8  ;;  %v1167_v26 = vcombine.high %v1165_v5, %v1165_v5  ;;  %1256 = vst.msk [vmem:[#allocation7 + $0x61] sm:$0x1] %vm967_vm3, %v1174_v13  ;;  %v1896_v27 = vpop.f32.mrb[5].mxu1 }
 0x3a3   :  { %v1097_v28 = vrot.slane %v1069_v15, %v2083_v8  ;;  %v1099_v30 = vcombine.high %v1083_v17, %v1083_v17  ;;  %v1100_v31 = vcombine.high %v1090_v19, %v1090_v19  ;;  %1241 = vst.msk [vmem:[#allocation7 + $0x25] sm:$0x1] %vm967_vm3, %v1090_v19  ;;  %1242 = vst.msk [vmem:[#allocation7 + $0x29] sm:$0x1] %vm967_vm3, %v1098_v20 }
 0x3a4   :  { %1244 = vst.msk [vmem:[#allocation7 + $0x31] sm:$0x1] %vm967_vm3, %v1083_v17  ;;  %v1181_v32 = vrot.slane %v1165_v5, %v2083_v8  ;;  %v1337_v33 = vcombine.high %v1335_v23, %v1335_v23  ;;  %v1351_v29 = vrot.slane %v1335_v23, %v2083_v8  ;;  %v1358_v0 = vrot.slane %v1336_v24, %v2083_v8 }
 0x3a5   :  { %v1366_v34 = vcombine.high %v1344_v25, %v1344_v25  ;;  %1508 = vst.msk [vmem:[#allocation7 + $0x22] sm:$0x1] %vm967_vm3, %v1344_v25  ;;  %v1101_v35 = vcombine.high %v1097_v28, %v1097_v28  ;;  %1243 = vst.msk [vmem:[#allocation7 + $0x2d] sm:$0x1] %vm967_vm3, %v1100_v31  ;;  %v1188_v36 = vrot.slane %v1166_v7, %v2083_v8 }
 0x3a6   :  { %1245 = vst.msk [vmem:[#allocation7 + $0x35] sm:$0x1] %vm967_vm3, %v1097_v28  ;;  %1246 = vst.msk [vmem:[#allocation7 + $0x39] sm:$0x1] %vm967_vm3, %v1099_v30  ;;  %v1195_v37 = vrot.slane %v1167_v26, %v2083_v8  ;;  %v1196_v38 = vcombine.high %v1174_v13, %v1174_v13  ;;  %v1365_v39 = vrot.slane %v1337_v33, %v2083_v8 }
 0x3a7   :  { %1260 = vst.msk [vmem:[#allocation7 + $0x71] sm:$0x1] %vm967_vm3, %v1181_v32  ;;  %v1367_v40 = vcombine.high %v1351_v29, %v1351_v29  ;;  %v1368_v41 = vcombine.high %v1358_v0, %v1358_v0  ;;  %1509 = vst.msk [vmem:[#allocation7 + $0x26] sm:$0x1] %vm967_vm3, %v1358_v0  ;;  %v1197_v42 = vcombine.high %v1181_v32, %v1181_v32 }
 0x3a8   :  { %1510 = vst.msk [vmem:[#allocation7 + $0x2a] sm:$0x1] %vm967_vm3, %v1366_v34  ;;  %1512 = vst.msk [vmem:[#allocation7 + $0x32] sm:$0x1] %vm967_vm3, %v1351_v29  ;;  %v1198_v43 = vcombine.high %v1188_v36, %v1188_v36  ;;  %v1199_v44 = vcombine.high %v1195_v37, %v1195_v37  ;;  %v1419_v45 = vcombine.high %v2236_v4, %v2236_v4 }
 0x3a9   :  { %1247 = vst.msk [vmem:[#allocation7 + $0x3d] sm:$0x1] %vm967_vm3, %v1101_v35  ;;  %1257 = vst.msk [vmem:[#allocation7 + $0x65] sm:$0x1] %vm967_vm3, %v1188_v36  ;;  %v1426_v46 = vrot.slane %v2236_v4, %v2083_v8  ;;  %v1369_v47 = vcombine.high %v1365_v39, %v1365_v39  ;;  %v1011_v48 = vrot.slane %v2231_v56, %v2083_v8 }
 0x3aa   :  { %1258 = vst.msk [vmem:[#allocation7 + $0x69] sm:$0x1] %vm967_vm3, %v1196_v38  ;;  %1261 = vst.msk [vmem:[#allocation7 + $0x75] sm:$0x1] %vm967_vm3, %v1195_v37  ;;  %v1018_v3 = vrot.slane %v1004_v59, %v2083_v8  ;;  %v1264_v49 = vmul.f32 %v2231_v56, %v2085_v9  ;;  %v1433_v50 = vrot.slane %v1419_v45, %v2083_v8 }
 0x3ab   :  { %1511 = vst.msk [vmem:[#allocation7 + $0x2e] sm:$0x1] %vm967_vm3, %v1368_v41  ;;  %1513 = vst.msk [vmem:[#allocation7 + $0x36] sm:$0x1] %vm967_vm3, %v1365_v39  ;;  %v1434_v51 = vcombine.high %v1426_v46, %v1426_v46  ;;  %v1442_v52 = vrot.slane %v1426_v46, %v2083_v8  ;;  %v1102_v53 = vcombine.high %v2240_v60, %v2240_v60 }
 0x3ac   :  { %1514 = vst.msk [vmem:[#allocation7 + $0x3a] sm:$0x1] %vm967_vm3, %v1367_v40  ;;  %1262 = vst.msk [vmem:[#allocation7 + $0x79] sm:$0x1] %vm967_vm3, %v1197_v42  ;;  %v1019_v54 = vcombine.high %v1011_v48, %v1011_v48  ;;  %v1020_v12 = vcombine.high %v1018_v3, %v1018_v3  ;;  %v1027_v55 = vrot.slane %v1011_v48, %v2083_v8 }
 0x3ad   :  { %1259 = vst.msk [vmem:[#allocation7 + $0x6d] sm:$0x1] %vm967_vm3, %v1198_v43  ;;  %1263 = vst.msk [vmem:[#allocation7 + $0x7d] sm:$0x1] %vm967_vm3, %v1199_v44  ;;  %v1034_v56 = vrot.slane %v1018_v3, %v2083_v8  ;;  %v1435_v57 = vcombine.high %v1433_v50, %v1433_v50  ;;  %v1449_v58 = vrot.slane %v1433_v50, %v2083_v8 }
 0x3ae   :  { %1515 = vst.msk [vmem:[#allocation7 + $0x3e] sm:$0x1] %vm967_vm3, %v1369_v47  ;;  %v1456_v4 = vrot.slane %v1434_v51, %v2083_v8  ;;  %v1464_v59 = vcombine.high %v1442_v52, %v1442_v52  ;;  %1524 = vst.msk [vmem:[#allocation7 + $0x62] sm:$0x1] %vm967_vm3, %v1442_v52  ;;  %v1041_v61 = vrot.slane %v1019_v54, %v2083_v8 }
 0x3af   :  { %v1048_v62 = vrot.slane %v1020_v12, %v2083_v8  ;;  %v1049_v63 = vcombine.high %v1027_v55, %v1027_v55  ;;  %v1050_v1 = vcombine.high %v1034_v56, %v1034_v56  ;;  %1232 = vst.msk [vmem:[#allocation7 + $0x1] sm:$0x1] %vm967_vm3, %v1027_v55  ;;  %1236 = vst.msk [vmem:[#allocation7 + $0x11] sm:$0x1] %vm967_vm3, %v1034_v56 }
 0x3b0   :  { %v1463_v2 = vrot.slane %v1435_v57, %v2083_v8  ;;  %v1465_v5 = vcombine.high %v1449_v58, %v1449_v58  ;;  %v1466_v7 = vcombine.high %v1456_v4, %v1456_v4  ;;  %1525 = vst.msk [vmem:[#allocation7 + $0x66] sm:$0x1] %vm967_vm3, %v1456_v4  ;;  %1526 = vst.msk [vmem:[#allocation7 + $0x6a] sm:$0x1] %vm967_vm3, %v1464_v59 }
 0x3b1   :  { %1528 = vst.msk [vmem:[#allocation7 + $0x72] sm:$0x1] %vm967_vm3, %v1449_v58  ;;  %v1272_v13 = vcombine.high %v1264_v49, %v1264_v49  ;;  %v1051_v15 = vcombine.high %v1041_v61, %v1041_v61  ;;  %v1052_v17 = vcombine.high %v1048_v62, %v1048_v62  ;;  %1233 = vst.msk [vmem:[#allocation7 + $0x5] sm:$0x1] %vm967_vm3, %v1041_v61 }
 0x3b2   :  { %1234 = vst.msk [vmem:[#allocation7 + $0x9] sm:$0x1] %vm967_vm3, %v1049_v63  ;;  %1237 = vst.msk [vmem:[#allocation7 + $0x15] sm:$0x1] %vm967_vm3, %v1048_v62  ;;  %v1279_v19 = vrot.slane %v1264_v49, %v2083_v8  ;;  %v1109_v20 = vrot.slane %v2240_v60, %v2083_v8  ;;  %v1467_v22 = vcombine.high %v1463_v2, %v1463_v2 }
 0x3b3   :  { %1238 = vst.msk [vmem:[#allocation7 + $0x19] sm:$0x1] %vm967_vm3, %v1050_v1  ;;  %1527 = vst.msk [vmem:[#allocation7 + $0x6e] sm:$0x1] %vm967_vm3, %v1466_v7  ;;  %v1286_v23 = vrot.slane %v1272_v13, %v2083_v8  ;;  %v1116_v24 = vrot.slane %v1102_v53, %v2083_v8  ;;  %v1266_v25 = vmul.f32 %v2240_v60, %v2089_v11 }
 0x3b4   :  { %1529 = vst.msk [vmem:[#allocation7 + $0x76] sm:$0x1] %vm967_vm3, %v1463_v2  ;;  %1530 = vst.msk [vmem:[#allocation7 + $0x7a] sm:$0x1] %vm967_vm3, %v1465_v5  ;;  %v1287_v26 = vcombine.high %v1279_v19, %v1279_v19  ;;  %v1295_v27 = vrot.slane %v1279_v19, %v2083_v8  ;;  %v1117_v28 = vcombine.high %v1109_v20, %v1109_v20 }
 0x3b5   :  { %1235 = vst.msk [vmem:[#allocation7 + $0xd] sm:$0x1] %vm967_vm3, %v1051_v15  ;;  %1239 = vst.msk [vmem:[#allocation7 + $0x1d] sm:$0x1] %vm967_vm3, %v1052_v17  ;;  %v1125_v30 = vrot.slane %v1109_v20, %v2083_v8  ;;  %v1288_v31 = vcombine.high %v1286_v23, %v1286_v23  ;;  %v1302_v32 = vrot.slane %v1286_v23, %v2083_v8 }
 0x3b6   :  { %1531 = vst.msk [vmem:[#allocation7 + $0x7e] sm:$0x1] %vm967_vm3, %v1467_v22  ;;  %v1118_v33 = vcombine.high %v1116_v24, %v1116_v24  ;;  %v1132_v29 = vrot.slane %v1116_v24, %v2083_v8  ;;  %v1309_v60 = vrot.slane %v1287_v26, %v2083_v8  ;;  %v1317_v0 = vcombine.high %v1295_v27, %v1295_v27 }
 0x3b7   :  { %1500 = vst.msk [vmem:[#allocation7 + $0x2] sm:$0x1] %vm967_vm3, %v1295_v27  ;;  %v1139_v34 = vrot.slane %v1117_v28, %v2083_v8  ;;  %v1147_v35 = vcombine.high %v1125_v30, %v1125_v30  ;;  %1248 = vst.msk [vmem:[#allocation7 + $0x41] sm:$0x1] %vm967_vm3, %v1125_v30  ;;  %v1316_v36 = vrot.slane %v1288_v31, %v2083_v8 }
 0x3b8   :  { %v1318_v37 = vcombine.high %v1302_v32, %v1302_v32  ;;  %1504 = vst.msk [vmem:[#allocation7 + $0x12] sm:$0x1] %vm967_vm3, %v1302_v32  ;;  %v1146_v38 = vrot.slane %v1118_v33, %v2083_v8  ;;  %v1148_v39 = vcombine.high %v1132_v29, %v1132_v29  ;;  %1252 = vst.msk [vmem:[#allocation7 + $0x51] sm:$0x1] %vm967_vm3, %v1132_v29 }
 0x3b9   :  { %v1319_v40 = vcombine.high %v1309_v60, %v1309_v60  ;;  %1501 = vst.msk [vmem:[#allocation7 + $0x6] sm:$0x1] %vm967_vm3, %v1309_v60  ;;  %1502 = vst.msk [vmem:[#allocation7 + $0xa] sm:$0x1] %vm967_vm3, %v1317_v0  ;;  %v1149_v41 = vcombine.high %v1139_v34, %v1139_v34  ;;  %v1370_v42 = vcombine.high %v1266_v25, %v1266_v25 }
 0x3ba   :  { %1249 = vst.msk [vmem:[#allocation7 + $0x45] sm:$0x1] %vm967_vm3, %v1139_v34  ;;  %1250 = vst.msk [vmem:[#allocation7 + $0x49] sm:$0x1] %vm967_vm3, %v1147_v35  ;;  %v1377_v43 = vrot.slane %v1266_v25, %v2083_v8  ;;  %v1320_v44 = vcombine.high %v1316_v36, %v1316_v36  ;;  %v1150_v45 = vcombine.high %v1146_v38, %v1146_v38 }
 0x3bb   :  { %1505 = vst.msk [vmem:[#allocation7 + $0x16] sm:$0x1] %vm967_vm3, %v1316_v36  ;;  %1506 = vst.msk [vmem:[#allocation7 + $0x1a] sm:$0x1] %vm967_vm3, %v1318_v37  ;;  %v1535_v46 = vrot.slane %v2247_v14, %v1534_v18  ;;  %v1539_v47 = vrot.slane %v2252_v21, %v1534_v18  ;;  %v1384_v48 = vrot.slane %v1370_v42, %v2083_v8 }
 0x3bc   :  { %1253 = vst.msk [vmem:[#allocation7 + $0x55] sm:$0x1] %vm967_vm3, %v1146_v38  ;;  %1254 = vst.msk [vmem:[#allocation7 + $0x59] sm:$0x1] %vm967_vm3, %v1148_v39  ;;  %v1385_v3 = vcombine.high %v1377_v43, %v1377_v43  ;;  %v1393_v49 = vrot.slane %v1377_v43, %v2083_v8 }
 0x3bd   :  { %1503 = vst.msk [vmem:[#allocation7 + $0xe] sm:$0x1] %vm967_vm3, %v1319_v40  ;;  %1251 = vst.msk [vmem:[#allocation7 + $0x4d] sm:$0x1] %vm967_vm3, %v1149_v41  ;;  %v1540_v50 = vmul.f32 %v1535_v46, %v2085_v9  ;;  %v1541_v14 = vmul.f32 %v1535_v46, %v2087_v10  ;;  %v1542_v6 = vmul.f32 %v1539_v47, %v2089_v11 }
 0x3be   :  { %1507 = vst.msk [vmem:[#allocation7 + $0x1e] sm:$0x1] %vm967_vm3, %v1320_v44  ;;  %1255 = vst.msk [vmem:[#allocation7 + $0x5d] sm:$0x1] %vm967_vm3, %v1150_v45  ;;  %v2369_v18 = vmul.f32 %v1539_v47, %v2101_v16  ;;  %v1386_v21 = vcombine.high %v1384_v48, %v1384_v48  ;;  %v1400_v51 = vrot.slane %v1384_v48, %v2083_v8 }
 0x3bf   :  { %v1407_v52 = vrot.slane %v1385_v3, %v2083_v8  ;;  %v1415_v53 = vcombine.high %v1393_v49, %v1393_v49  ;;  %1516 = vst.msk [vmem:[#allocation7 + $0x42] sm:$0x1] %vm967_vm3, %v1393_v49  ;;  %v1548_v54 = vcombine.high %v1540_v50, %v1540_v50  ;;  %v1555_v12 = vrot.slane %v1540_v50, %v2083_v8 }
 0x3c0   :  { %v1597_v55 = vcombine.high %v1541_v14, %v1541_v14  ;;  %v1604_v9 = vrot.slane %v1541_v14, %v2083_v8  ;;  %v1414_v10 = vrot.slane %v1386_v21, %v2083_v8  ;;  %v1416_v11 = vcombine.high %v1400_v51, %v1400_v51  ;;  %1520 = vst.msk [vmem:[#allocation7 + $0x52] sm:$0x1] %vm967_vm3, %v1400_v51 }
 0x3c1   :  { %v1417_v56 = vcombine.high %v1407_v52, %v1407_v52  ;;  %1517 = vst.msk [vmem:[#allocation7 + $0x46] sm:$0x1] %vm967_vm3, %v1407_v52  ;;  %1518 = vst.msk [vmem:[#allocation7 + $0x4a] sm:$0x1] %vm967_vm3, %v1415_v53  ;;  %v1646_v16 = vcombine.high %v1542_v6, %v1542_v6  ;;  %v1562_v57 = vrot.slane %v1548_v54, %v2083_v8 }
 0x3c2   :  { %v1563_v58 = vcombine.high %v1555_v12, %v1555_v12  ;;  %v1571_v4 = vrot.slane %v1555_v12, %v2083_v8  ;;  %v1611_v59 = vrot.slane %v1597_v55, %v2083_v8  ;;  %v1418_v61 = vcombine.high %v1414_v10, %v1414_v10  ;;  %1521 = vst.msk [vmem:[#allocation7 + $0x56] sm:$0x1] %vm967_vm3, %v1414_v10 }
 0x3c3   :  { %1519 = vst.msk [vmem:[#allocation7 + $0x4e] sm:$0x1] %vm967_vm3, %v1417_v56  ;;  %1522 = vst.msk [vmem:[#allocation7 + $0x5a] sm:$0x1] %vm967_vm3, %v1416_v11  ;;  %v1612_v62 = vcombine.high %v1604_v9, %v1604_v9  ;;  %v1620_v63 = vrot.slane %v1604_v9, %v2083_v8  ;;  %v1653_v1 = vrot.slane %v1542_v6, %v2083_v8 }
 0x3c4   :  { %v1564_v2 = vcombine.high %v1562_v57, %v1562_v57  ;;  %v1578_v5 = vrot.slane %v1562_v57, %v2083_v8  ;;  %v1585_v7 = vrot.slane %v1563_v58, %v2083_v8  ;;  %v1593_v13 = vcombine.high %v1571_v4, %v1571_v4  ;;  %1776 = vst.msk [vmem:[#allocation7 + $0x3] sm:$0x1] %vm967_vm3, %v1571_v4 }
 0x3c5   :  { %1523 = vst.msk [vmem:[#allocation7 + $0x5e] sm:$0x1] %vm967_vm3, %v1418_v61  ;;  %v1613_v15 = vcombine.high %v1611_v59, %v1611_v59  ;;  %v1627_v17 = vrot.slane %v1611_v59, %v2083_v8  ;;  %v1634_v19 = vrot.slane %v1612_v62, %v2083_v8  ;;  %v1642_v20 = vcombine.high %v1620_v63, %v1620_v63 }
 0x3c6   :  { %1784 = vst.msk [vmem:[#allocation7 + $0x23] sm:$0x1] %vm967_vm3, %v1620_v63  ;;  %v1592_v22 = vrot.slane %v1564_v2, %v2083_v8  ;;  %v1594_v23 = vcombine.high %v1578_v5, %v1578_v5  ;;  %v1595_v24 = vcombine.high %v1585_v7, %v1585_v7  ;;  %1777 = vst.msk [vmem:[#allocation7 + $0x7] sm:$0x1] %vm967_vm3, %v1585_v7 }
 0x3c7   :  { %1778 = vst.msk [vmem:[#allocation7 + $0xb] sm:$0x1] %vm967_vm3, %v1593_v13  ;;  %1780 = vst.msk [vmem:[#allocation7 + $0x13] sm:$0x1] %vm967_vm3, %v1578_v5  ;;  %v1660_v25 = vrot.slane %v1646_v16, %v2083_v8  ;;  %v1641_v26 = vrot.slane %v1613_v15, %v2083_v8  ;;  %v1643_v27 = vcombine.high %v1627_v17, %v1627_v17 }
 0x3c8   :  { %v1644_v28 = vcombine.high %v1634_v19, %v1634_v19  ;;  %1785 = vst.msk [vmem:[#allocation7 + $0x27] sm:$0x1] %vm967_vm3, %v1634_v19  ;;  %1786 = vst.msk [vmem:[#allocation7 + $0x2b] sm:$0x1] %vm967_vm3, %v1642_v20  ;;  %v1661_v30 = vcombine.high %v1653_v1, %v1653_v1  ;;  %v1596_v31 = vcombine.high %v1592_v22, %v1592_v22 }
 0x3c9   :  { %1788 = vst.msk [vmem:[#allocation7 + $0x33] sm:$0x1] %vm967_vm3, %v1627_v17  ;;  %1779 = vst.msk [vmem:[#allocation7 + $0xf] sm:$0x1] %vm967_vm3, %v1595_v24  ;;  %v1662_v32 = vcombine.high %v1660_v25, %v1660_v25  ;;  %v1669_v33 = vrot.slane %v1653_v1, %v2083_v8  ;;  %v1676_v29 = vrot.slane %v1660_v25, %v2083_v8 }
 0x3ca   :  { %1781 = vst.msk [vmem:[#allocation7 + $0x17] sm:$0x1] %vm967_vm3, %v1592_v22  ;;  %1782 = vst.msk [vmem:[#allocation7 + $0x1b] sm:$0x1] %vm967_vm3, %v1594_v23  ;;  %v1645_v60 = vcombine.high %v1641_v26, %v1641_v26  ;;  %v1683_v0 = vrot.slane %v1661_v30, %v2083_v8  ;;  %v1695_v34 = vcombine.high %v2369_v18, %v2369_v18 }
 0x3cb   :  { %1787 = vst.msk [vmem:[#allocation7 + $0x2f] sm:$0x1] %vm967_vm3, %v1644_v28  ;;  %1789 = vst.msk [vmem:[#allocation7 + $0x37] sm:$0x1] %vm967_vm3, %v1641_v26  ;;  %v1702_v35 = vrot.slane %v2369_v18, %v2083_v8  ;;  %v1690_v36 = vrot.slane %v1662_v32, %v2083_v8  ;;  %v1691_v37 = vcombine.high %v1669_v33, %v1669_v33 }
 0x3cc   :  { %1790 = vst.msk [vmem:[#allocation7 + $0x3b] sm:$0x1] %vm967_vm3, %v1643_v27  ;;  %1783 = vst.msk [vmem:[#allocation7 + $0x1f] sm:$0x1] %vm967_vm3, %v1596_v31  ;;  %v1692_v38 = vcombine.high %v1676_v29, %v1676_v29  ;;  %v1693_v39 = vcombine.high %v1683_v0, %v1683_v0  ;;  %v1709_v40 = vrot.slane %v1695_v34, %v2083_v8 }
 0x3cd   :  { %1792 = vst.msk [vmem:[#allocation7 + $0x43] sm:$0x1] %vm967_vm3, %v1669_v33  ;;  %1796 = vst.msk [vmem:[#allocation7 + $0x53] sm:$0x1] %vm967_vm3, %v1676_v29  ;;  %v1710_v41 = vcombine.high %v1702_v35, %v1702_v35  ;;  %v1718_v42 = vrot.slane %v1702_v35, %v2083_v8  ;;  %v1694_v43 = vcombine.high %v1690_v36, %v1690_v36 }
 0x3ce   :  { %1791 = vst.msk [vmem:[#allocation7 + $0x3f] sm:$0x1] %vm967_vm3, %v1645_v60  ;;  %1793 = vst.msk [vmem:[#allocation7 + $0x47] sm:$0x1] %vm967_vm3, %v1683_v0  ;;  %v1711_v44 = vcombine.high %v1709_v40, %v1709_v40  ;;  %v1725_v45 = vrot.slane %v1709_v40, %v2083_v8 }
 0x3cf   :  { %1794 = vst.msk [vmem:[#allocation7 + $0x4b] sm:$0x1] %vm967_vm3, %v1691_v37  ;;  %1797 = vst.msk [vmem:[#allocation7 + $0x57] sm:$0x1] %vm967_vm3, %v1690_v36  ;;  %v1732_v46 = vrot.slane %v1710_v41, %v2083_v8  ;;  %v1740_v47 = vcombine.high %v1718_v42, %v1718_v42 }
 0x3d0   :  { %1798 = vst.msk [vmem:[#allocation7 + $0x5b] sm:$0x1] %vm967_vm3, %v1692_v38  ;;  %1795 = vst.msk [vmem:[#allocation7 + $0x4f] sm:$0x1] %vm967_vm3, %v1693_v39  ;;  %v1739_v48 = vrot.slane %v1711_v44, %v2083_v8  ;;  %v1741_v3 = vcombine.high %v1725_v45, %v1725_v45 }
 0x3d1   :  { %1800 = vst.msk [vmem:[#allocation7 + $0x63] sm:$0x1] %vm967_vm3, %v1718_v42  ;;  %1799 = vst.msk [vmem:[#allocation7 + $0x5f] sm:$0x1] %vm967_vm3, %v1694_v43  ;;  %v1742_v49 = vcombine.high %v1732_v46, %v1732_v46 }
 0x3d2   :  { %1801 = vst.msk [vmem:[#allocation7 + $0x67] sm:$0x1] %vm967_vm3, %v1732_v46  ;;  %1802 = vst.msk [vmem:[#allocation7 + $0x6b] sm:$0x1] %vm967_vm3, %v1740_v47  ;;  %v1743_v50 = vcombine.high %v1739_v48, %v1739_v48 }
 0x3d3   :  { %1804 = vst.msk [vmem:[#allocation7 + $0x73] sm:$0x1] %vm967_vm3, %v1725_v45  ;;  %1803 = vst.msk [vmem:[#allocation7 + $0x6f] sm:$0x1] %vm967_vm3, %v1742_v49 }
 0x3d4   :  { %1805 = vst.msk [vmem:[#allocation7 + $0x77] sm:$0x1] %vm967_vm3, %v1739_v48  ;;  %1806 = vst.msk [vmem:[#allocation7 + $0x7b] sm:$0x1] %vm967_vm3, %v1741_v3 }
 0x3d5   :  { %1807 = vst.msk [vmem:[#allocation7 + $0x7f] sm:$0x1] %vm967_vm3, %v1743_v50 }
 0x3d6   :  { %1995 = shalt.err (!%p1992_p6)
}
 0x3d7   :  { %s1996_s19 = scalar_lea.hbm %s2456_s3, 2048 }
 0x3d8   :  { %p1997_p7 = scmp.ne.s32.totalorder %s2456_s3, %s1996_s19  ;;  %p2000_p8 = scmp.lt.u32.totalorder %s1996_s19, %s2456_s3 }
 0x3da   :  { %p2002_p9 = pnand %p2000_p8, %p1997_p7 }
 0x3dc   :  { %2005 = shalt.err (!%p2002_p9)
}
 0x3dd   :  { %s2021_s24 = smov 64   ;;  %s2022_s25 = smov 4  }
 0x3de   :  { %1819 = dma.vmem_to_hbm [thread:$0]  %s1814_s15, 2048, %s2456_s3, [#allocation4], %s2021_s24, %s2021_s24, %s2022_s25  }
 0x3df   :  { %2010 = dma.done.wait [#allocation4], 2048  }
 0x3e0   :  { %2011 = vsyncadd [#allocation4], 4294965248 }
 0x3e1   :  { %1823 = vsyncpa [#allocation3], 1 }
 0x3e2   :  { %1824 = vsyncpa [#allocation6], 1 }
 0x3e3   :  { %1825 = vsyncpa [#allocation4], 1 }

</bundles_post_ra>
